<compile_context>
chip_gen: v5e
topology: v5e:2x2
jax: 0.10.0
libtpu: 0.0.40
codegen_flags: <defaults>
</compile_context>

<pallas_src>
import jax
import jax.numpy as jnp
from jax.experimental import pallas as pl
from jax.experimental.pallas import tpu as pltpu


def _logreg_kernel(x_ref, w_ref, b_ref, o_ref):
    # x_ref: (TILE_N, F) VMEM; w_ref: (1, F) VMEM; b_ref: (1, 1) SMEM scalar;
    # o_ref: (1, TILE_N // 128, 128) VMEM (lane-dense sigmoid slab).
    rows, feat = x_ref.shape
    x = x_ref[...]                       # (TILE_N, F) f32
    w = w_ref[...]                       # (1, F) f32, broadcasts over rows
    b = b_ref[0, 0]                      # scalar bias from SMEM
    prod = x * w                         # VPU elementwise
    # Split rows into chunks of 128 (splits the sublane axis on a vreg-tile
    # boundary -> layout-preserving) and reduce over features. Result is a
    # lane-dense (rows // 128, 128) slab: tile row r lands at [r // 128, r % 128].
    logits = jnp.sum(prod.reshape(rows // 128, 128, feat), axis=-1) + b
    o_ref[0] = jax.nn.sigmoid(logits).astype(o_ref.dtype)


def _round_up(v, m):
    return (v + m - 1) // m * m


def _vmem_capacity_bytes():
    try:
        cap = getattr(pltpu.get_tpu_info(), "vmem_capacity_bytes", None)
        if cap:
            return int(cap)
    except Exception:
        pass
    return 64 * 1024 * 1024  # conservative: v7x physical VMEM per TensorCore


def logistic_regression_forward(x, weight, bias, *, tile_n=None):
    """sigmoid(x @ weight.T + bias). x:(N,F), weight:(1,F), bias:(1,) -> (N,1)."""
    n, f = x.shape
    itemsize = jnp.dtype(x.dtype).itemsize
    f_pad = _round_up(f, 128)            # lane-padded feature footprint in VMEM

    capacity = _vmem_capacity_bytes()
    # Per x-buffer budget: ~16 MiB on 64 MiB parts (v7x), ~24 MiB on 128 MiB parts.
    per_buffer_budget = (24 << 20) if capacity > (96 << 20) else (16 << 20)

    if tile_n is None:
        tile_n = (per_buffer_budget // (f_pad * itemsize)) // 128 * 128
    tile_n = int(max(128, _round_up(int(tile_n), 128)))
    # Never useful to exceed the 128-rounded sample count.
    tile_n = min(tile_n, _round_up(n, 128))
    # TODO(synk): for very large F (128-row tiles still over VMEM budget), add a
    # second "arbitrary" grid axis over F with a VMEM f32 accumulator.

    if n < tile_n:
        # Whole input fits in one tile: pad to the tile (bounded, <= one-tile copy).
        x = jnp.pad(x, ((0, tile_n - n), (0, 0)))
    num_tiles = pl.cdiv(max(n, tile_n), tile_n)
    r = tile_n // 128

    bias2d = bias.reshape(1, 1).astype(jnp.float32)
    weight2d = weight.reshape(1, f).astype(x.dtype)

    # VMEM accounting with lane-padded footprints: 2 x-tile buffers + 2 (tiny,
    # lane-dense) output buffers + weight, plus headroom; clamped to ~85% of
    # physical VMEM for the current generation.
    x_tile_bytes = tile_n * f_pad * itemsize
    out_tile_bytes = r * 128 * itemsize
    w_bytes = 8 * f_pad * itemsize
    vmem_limit = 2 * (x_tile_bytes + out_tile_bytes + w_bytes) + (4 << 20)
    vmem_limit = int(min(max(vmem_limit, 16 << 20), int(0.85 * capacity)))

    out = pl.pallas_call(
        _logreg_kernel,
        out_shape=jax.ShapeDtypeStruct((num_tiles, r, 128), x.dtype),
        grid=(num_tiles,),
        in_specs=[
            pl.BlockSpec((tile_n, f), lambda i: (i, 0)),        # streamed x row tiles
            pl.BlockSpec((1, f), lambda i: (0, 0)),             # weight: VMEM-resident
            pl.BlockSpec(memory_space=pltpu.MemorySpace.SMEM),  # bias scalar in SMEM
        ],
        out_specs=pl.BlockSpec((1, r, 128), lambda i: (i, 0, 0)),
        compiler_params=pltpu.CompilerParams(
            dimension_semantics=("parallel",),   # shard row tiles across TCs
            vmem_limit_bytes=vmem_limit,
        ),
    )(x, weight2d, bias2d)

    # Flatten lane-dense slabs back to (N, 1); rows >= n (partial last tile or
    # single-tile padding) are sliced off here.
    return out.reshape(-1)[:n].reshape(n, 1)


if __name__ == "__main__":
    key = jax.random.PRNGKey(0)
    k_x, k_w, k_b = jax.random.split(key, 3)

    # Small shapes consistent with the module: N samples, F features.
    n_samples, n_features = 200, 32

    x = jax.random.normal(k_x, (n_samples, n_features), dtype=jnp.float32)

    # Deterministic nn.Linear-style init: U(-1/sqrt(F), 1/sqrt(F))
    bound = 1.0 / jnp.sqrt(jnp.float32(n_features))
    weight = jax.random.uniform(k_w, (1, n_features), jnp.float32, -bound, bound)
    bias = jax.random.uniform(k_b, (1,), jnp.float32, -bound, bound)

    ref = jax.nn.sigmoid(x @ weight.T + bias)

    # Small explicit tile: exercises the multi-tile grid with an unpadded
    # partial last input block (no wrapper-side pad of x).
    out = jax.block_until_ready(
        logistic_regression_forward(x, weight, bias, tile_n=128))
    assert out.shape == (n_samples, 1)
    assert jnp.allclose(out, ref, atol=1e-5, rtol=1e-5)

    # Default auto-sized tile path (single tile here; bounded small pad).
    out2 = jax.block_until_ready(logistic_regression_forward(x, weight, bias))
    assert jnp.allclose(out2, ref, atol=1e-5, rtol=1e-5)

    # TODO(synk): training loop (BCELoss + SGD) and sklearn preprocessing from the
    # original module are not part of forward() and are not implemented here.
    print("KERNEL_OK")
</pallas_src>

<mosaic_0001>
module attributes {stable_mosaic.version = 11 : i64} {
  func.func @_logreg_kernel(%arg0: i32, %arg1: memref<128x32xf32, #tpu.memory_space<vmem>>, %arg2: memref<1x32xf32, #tpu.memory_space<vmem>>, %arg3: memref<1x1xf32, #tpu.memory_space<smem>>, %arg4: memref<1x1x128xf32, #tpu.memory_space<vmem>>) attributes {dimension_semantics = [#tpu.dimension_semantics<parallel>], iteration_bounds = array<i64: 2>, scalar_prefetch = 0 : i64, scratch_operands = 0 : i64, tpu.core_type = #tpu.core_type<tc>, window_params = [{transform_indices = @transform_0, window_bounds = array<i64: 128, 32>}, {pipeline_mode = #tpu.pipeline_mode<synchronous>, transform_indices = @transform_1, window_bounds = array<i64: 1, 32>}, {transform_indices = @transform_2, window_bounds = array<i64: 1, 1>}, {transform_indices = @transform_3, window_bounds = array<i64: 1, 1, 128>}]} {
    %c0 = arith.constant 0 : index
    %c0_0 = arith.constant 0 : index
    %0 = vector.load %arg1[%c0, %c0_0] : memref<128x32xf32, #tpu.memory_space<vmem>>, vector<128x32xf32>
    %c0_1 = arith.constant 0 : index
    %c0_2 = arith.constant 0 : index
    %1 = vector.load %arg2[%c0_1, %c0_2] : memref<1x32xf32, #tpu.memory_space<vmem>>, vector<1x32xf32>
    %c0_3 = arith.constant 0 : index
    %c0_4 = arith.constant 0 : index
    %2 = memref.load %arg3[%c0_3, %c0_4] : memref<1x1xf32, #tpu.memory_space<smem>>
    %3 = vector.broadcast %1 : vector<1x32xf32> to vector<128x32xf32>
    %4 = arith.mulf %0, %3 : vector<128x32xf32>
    %5 = vector.shape_cast %4 : vector<128x32xf32> to vector<1x128x32xf32>
    %cst = arith.constant dense<0.000000e+00> : vector<1x128xf32>
    %6 = vector.multi_reduction <add>, %5, %cst [2] : vector<1x128x32xf32> to vector<1x128xf32>
    %7 = vector.broadcast %2 : f32 to vector<1x128xf32>
    %8 = arith.addf %6, %7 : vector<1x128xf32>
    %9 = arith.negf %8 : vector<1x128xf32>
    %10 = math.exp %9 : vector<1x128xf32>
    %cst_5 = arith.constant 1.000000e+00 : f32
    %11 = vector.broadcast %cst_5 : f32 to vector<1x128xf32>
    %12 = arith.addf %11, %10 : vector<1x128xf32>
    %13 = arith.divf %11, %12 : vector<1x128xf32>
    %c0_6 = arith.constant 0 : index
    %c0_7 = arith.constant 0 : index
    %c0_8 = arith.constant 0 : index
    %14 = vector.load %arg4[%c0_6, %c0_7, %c0_8] : memref<1x1x128xf32, #tpu.memory_space<vmem>>, vector<1x1x128xf32>
    %15 = vector.shape_cast %14 : vector<1x1x128xf32> to vector<1x128xf32>
    %16 = vector.shape_cast %13 : vector<1x128xf32> to vector<1x1x128xf32>
    tpu.vector_store %arg4[%c0_6, %c0_7, %c0_8], %16 {strides = array<i32>} : memref<1x1x128xf32, #tpu.memory_space<vmem>>, vector<1x1x128xf32>,
    return
  }
  func.func @transform_0(%arg0: i32) -> (i32, i32) {
    %c0_i32 = arith.constant 0 : i32
    %c0_i32_0 = arith.constant 0 : i32
    return %arg0, %c0_i32 : i32, i32
  }
  func.func @transform_1(%arg0: i32) -> (i32, i32) {
    %c0_i32 = arith.constant 0 : i32
    %c0_i32_0 = arith.constant 0 : i32
    %c0_i32_1 = arith.constant 0 : i32
    return %c0_i32, %c0_i32_0 : i32, i32
  }
  func.func @transform_2(%arg0: i32) -> (i32, i32) {
    %c0_i32 = arith.constant 0 : i32
    %c0_i32_0 = arith.constant 0 : i32
    %c0_i32_1 = arith.constant 0 : i32
    return %c0_i32, %c0_i32_0 : i32, i32
  }
  func.func @transform_3(%arg0: i32) -> (i32, i32, i32) {
    %c0_i32 = arith.constant 0 : i32
    %c0_i32_0 = arith.constant 0 : i32
    %c0_i32_1 = arith.constant 0 : i32
    return %arg0, %c0_i32, %c0_i32_0 : i32, i32, i32
  }
}

</mosaic_0001>

<bundles_post_ra>
// kernel: tpu_custom_call.1
= control target key start
LH: loop header
LB: loop body
LE: loop exit
PB: predicated region body
PF: predicated region fallthrough
CT: control target
= control target key end

     0   :  { %s1616_s0 = inlined_call_operand.vmem [shape: f32[200,32], index: 0, kind: input, shape index: {}]   ;;  %s1617_s1 = inlined_call_operand.vmem [shape: f32[1,32], index: 1, kind: input, shape index: {}]   ;;  %s1618_s2 = inlined_call_operand.<no memory space> [shape: f32[1,1], index: 2, kind: input, shape index: {}]   ;;  %s1619_s3 = inlined_call_operand.hbm [shape: f32[2,1,128], index: 3, kind: output, shape index: {}]  }
   0x1   :  { %8 = sst [smem:[#allocation2]] %s1618_s2 }
   0x2   :  { %9 = vsyncpa [#allocation4], 0 }
   0x3   :  { %11 = vsyncpa [#allocation4 + $0x1], 0  ;;  %s962_s14 = smov 0   ;;  %s964_s15 = smov 0  }
   0x4   :  { %s966_s16 = smov 0   ;;  %s968_s17 = smov 0  }
   0x5 LB: > { %s983_s2 = sadd.s32 4294967295, %s937_s17   ;;  %s747_s18 = sadd.s32 4294967294, %s937_s17   ;;  %s937_s17 = sphi %s968_s17, %s1679_s17   ;;  %s933_s16 = sphi %s966_s16, %s1678_s16   ;;  %s929_s15 = sphi %s964_s15, %s1677_s15   ;;  %s925_s14 = sphi %s962_s14, %s1676_s14  }
   0x6   : > { %s987_s19 = sadd.s32 1, %s937_s17   ;;  %s92_s20 = sadd.s32 1, %s933_s16 }
   0x7   : > { %s89_s21 = ssub.s32 %s937_s17, %s987_s19  ;;  %p102_p0 = scmp.ne.s32.totalorder %s933_s16, %s929_s15 }
   0x8   : > { %p90_p1 = scmp.eq.s32.totalorder %s89_s21, 0  ;;  %p103_p2 = scmp.eq.s32.totalorder %s983_s2, 1 }
   0x9   : > { %p108_p3 = scmp.ne.s32.totalorder %s929_s15, %s925_s14  ;;  %p109_p4 = scmp.eq.s32.totalorder %s747_s18, 1 }
   0xa   : > { %s998_s22 = scalar_select %p90_p1, %s933_s16, %s92_s20  }
   0xb   : > { %p1000_p5 = por %p103_p2, %p102_p0  ;;  %p1004_p6 = por %p109_p4, %p108_p3 }
   0xc   : > { %p750_p7 = scmp.ge.s32.totalorder %s937_s17, 1  ;;  %p150_p8 = scmp.lt.s32.totalorder %s937_s17, 3 }
   0xe   : > { %p151_p9 = pnand %p750_p7, %p150_p8 }
   0xf   : > { %s751_s25 = sshll.u32 (!%p151_p9), %s983_s2, 4  ;;  %s208_s5 = sld [smem:[#allocation2]] (!%p151_p9) }
  0x10   : > { %154 = sbr.rel (%p151_p9) target bundleno = 240 (0xf0), region = 32  ;;  %p182_p10 = scmp.lt.s32.totalorder (!%p151_p9), %s751_s25, 24 }
  0x11   : > { %s175_s6 = sand.u32 (!%p151_p9), 1, %s929_s15   ;;  %s688_s9 = scalar_lea.hbm (!%p151_p9), %s1619_s3, %s983_s2 }
  0x12   : > { %s176_s10 = scalar_lea.vmem (!%p151_p9), [#allocation3], %s175_s6  ;;  %s692_s12 = sshll.u32 (!%p151_p9), %s688_s9, 4  ;;  %s693_s12 = int_to_ptr.hbm [resolvable:$true] %s692_s12 }
  0x13   : > { %s690_s11 = sshll.u32 (!%p151_p9), %s176_s10, 4  ;;  %s680_s13 = scalar_lea.sflag (!%p151_p9), [#allocation4], %s175_s6  ;;  %s691_s11 = int_to_ptr.vmem [resolvable:$true] %s690_s11 }
  0x14   : > { %s889_s2 = sshra.s32 (!%p151_p9), %s693_s12, 4  ;;  %s890_s2 = int_to_ptr.hbm [resolvable:$true] %s889_s2 }
  0x15   : > { %s1681_s25 = smov (!%p182_p10, %s751_s25), 24  ;;  %v1014_v0 = vld [vmem:[%s1617_s1] ss:$0 sm:$0xff]  ;;  %vm228_vm0 = vcmask 261120   ;;  %v1069_v49 = vstv %s208_s5  ;;  %s891_s18 = scalar_lea.hbm %s890_s2, 1 }
  0x16   : > { %s752_s28 = sshll.u32 %s1681_s25, 3  ;;  %p892_p11 = scmp.ne.s32.totalorder %s890_s2, %s891_s18 }
  0x17   : > { %s1019_s4 = scalar_lea.vmem %s1616_s0, %s752_s28  ;;  %s895_s25 = scalar_lea.hbm %s1619_s3, 2 }
  0x18   : > { %v195_v1 = vld [vmem:[%s1019_s4 + $0x20] sm:$0xff]  ;;  %v193_v2 = vld [vmem:[%s1019_s4 + $0x10] sm:$0xff]  ;;  %v196_v7 = vld [vmem:[%s1019_s4 + $0x28] sm:$0xff]  ;;  %p893_p12 = pnand %p892_p11, %p1000_p5  ;;  %p896_p0 = scmp.lt.s32.totalorder %s890_s2, %s1619_s3 }
  0x19   : > { %v191_v3 = vld [vmem:[%s1019_s4] sm:$0xff]  ;;  %v216_v4 = vmul.f32 %v1014_v0, %v195_v1  ;;  %v214_v5 = vmul.f32 %v1014_v0, %v193_v2  ;;  %v194_v8 = vld [vmem:[%s1019_s4 + $0x18] sm:$0xff]  ;;  %v192_v12 = vld [vmem:[%s1019_s4 + $0x8] sm:$0xff]  ;;  %v217_v13 = vmul.f32 %v1014_v0, %v196_v7  ;;  %p897_p1 = scmp.lt.s32.totalorder %s895_s25, %s891_s18 }
  0x1a   : > { %v212_v6 = vmul.f32 %v1014_v0, %v191_v3  ;;  %v215_v14 = vmul.f32 %v1014_v0, %v194_v8  ;;  %v213_v15 = vmul.f32 %v1014_v0, %v192_v12  ;;  %v199_v19 = vld [vmem:[%s1019_s4 + $0x40] sm:$0xff]  ;;  %v198_v20 = vld [vmem:[%s1019_s4 + $0x38] sm:$0xff]  ;;  %v197_v21 = vld [vmem:[%s1019_s4 + $0x30] sm:$0xff]  ;;  %p894_p13 = pneg %p893_p12 }
  0x1b   : > { %v241_v9 = vsel %vm228_vm0, %v216_v4, 0.0  ;;  %v235_v10 = vsel %vm228_vm0, %v214_v5, 0.0  ;;  %v244_v16 = vsel %vm228_vm0, %v217_v13, 0.0  ;;  %v220_v22 = vmul.f32 %v1014_v0, %v199_v19  ;;  %v202_v28 = vld [vmem:[%s1019_s4 + $0x58] sm:$0xff]  ;;  %v201_v29 = vld [vmem:[%s1019_s4 + $0x50] sm:$0xff]  ;;  %v200_v30 = vld [vmem:[%s1019_s4 + $0x48] sm:$0xff]  ;;  %p898_p2 = por %p897_p1, %p896_p0 }
  0x1c   : > { %v229_v11 = vsel %vm228_vm0, %v212_v6, 0.0  ;;  %242 = vadd.xlane.f32.xlu2 %v241_v9  ;;  %236 = vadd.xlane.f32.xlu1 %v235_v10  ;;  %v238_v17 = vsel %vm228_vm0, %v215_v14, 0.0  ;;  %v232_v18 = vsel %vm228_vm0, %v213_v15, 0.0  ;;  %v219_v23 = vmul.f32 %v1014_v0, %v198_v20  ;;  %v205_v37 = vld [vmem:[%s1019_s4 + $0x70] sm:$0xff]  ;;  %v204_v38 = vld [vmem:[%s1019_s4 + $0x68] sm:$0xff]  ;;  %v203_v39 = vld [vmem:[%s1019_s4 + $0x60] sm:$0xff] }
  0x1d   : > { %230 = vadd.xlane.f32.xlu0 %v229_v11  ;;  %v218_v24 = vmul.f32 %v1014_v0, %v197_v21  ;;  %v253_v25 = vsel %vm228_vm0, %v220_v22, 0.0  ;;  %v223_v31 = vmul.f32 %v1014_v0, %v202_v28  ;;  %v222_v32 = vmul.f32 %v1014_v0, %v201_v29  ;;  %v206_v46 = vld [vmem:[%s1019_s4 + $0x78] sm:$0xff]  ;;  %p899_p3 = pnand %p898_p2, %p894_p13 }
  0x1e   : > { %v250_v26 = vsel %vm228_vm0, %v219_v23, 0.0  ;;  %v221_v33 = vmul.f32 %v1014_v0, %v200_v30  ;;  %v226_v40 = vmul.f32 %v1014_v0, %v205_v37  ;;  %v225_v41 = vmul.f32 %v1014_v0, %v204_v38 }
  0x1f   : > { %v247_v27 = vsel %vm228_vm0, %v218_v24, 0.0  ;;  %v262_v34 = vsel %vm228_vm0, %v223_v31, 0.0  ;;  %v259_v35 = vsel %vm228_vm0, %v222_v32, 0.0  ;;  %v224_v42 = vmul.f32 %v1014_v0, %v203_v39 }
  0x20   : > { %v256_v36 = vsel %vm228_vm0, %v221_v33, 0.0  ;;  %v271_v43 = vsel %vm228_vm0, %v226_v40, 0.0  ;;  %v268_v44 = vsel %vm228_vm0, %v225_v41, 0.0  ;;  %v227_v47 = vmul.f32 %v1014_v0, %v206_v46 }
  0x21   : > { %v265_v45 = vsel %vm228_vm0, %v224_v42, 0.0  ;;  %v614_v9 = vlaneseq }
  0x22   : > { %v274_v48 = vsel %vm228_vm0, %v227_v47, 0.0 }
  0x23   : > { %v1086_v13 = vand.u32 127, %v614_v9 }
  0x24   : > { %245 = vadd.xlane.f32.xlu2 %v244_v16  ;;  %239 = vadd.xlane.f32.xlu1 %v238_v17 }
  0x25   : > { %233 = vadd.xlane.f32.xlu0 %v232_v18  ;;  %v1099_v22 = vadd.s32 4294967264, %v1086_v13  ;;  %v1117_v31 = vadd.s32 4294967256, %v1086_v13 }
  0x2c   : > { %254 = vadd.xlane.f32.xlu2 %v253_v25  ;;  %251 = vadd.xlane.f32.xlu1 %v250_v26  ;;  %v1106_v25 = vadd.s32 4294967280, %v1086_v13 }
  0x2d   : > { %248 = vadd.xlane.f32.xlu0 %v247_v27 }
  0x34   : > { %263 = vadd.xlane.f32.xlu2 %v262_v34  ;;  %260 = vadd.xlane.f32.xlu1 %v259_v35  ;;  %v1120_v34 = vadd.s32 4294967272, %v1086_v13  ;;  %v1124_v35 = vadd.s32 4294967288, %v1086_v13 }
  0x35   : > { %257 = vadd.xlane.f32.xlu0 %v256_v36 }
  0x3c   : > { %272 = vadd.xlane.f32.xlu2 %v271_v43  ;;  %269 = vadd.xlane.f32.xlu1 %v268_v44 }
  0x3d   : > { %266 = vadd.xlane.f32.xlu0 %v265_v45 }
  0x45   : > { %275 = vadd.xlane.f32.xlu0 %v274_v48 }
  0x8f   : > { %v243_v50 = vpop.xlane.xlu2 %242  ;;  %v237_v51 = vpop.xlane.xlu1 %236 }
  0x90   : > { %v282_v52 = vadd.f32 %v1069_v49, %v243_v50  ;;  %v280_v53 = vadd.f32 %v1069_v49, %v237_v51  ;;  %v231_v54 = vpop.xlane.xlu0 %230 }
  0x91   : > { %v278_v55 = vadd.f32 %v1069_v49, %v231_v54  ;;  %v1149_v54 = vadd.s32 4294967240, %v1086_v13 }
  0x92   : > { %v757_v56 = vmul.f32 -1.442695, %v282_v52  ;;  %v755_v57 = vmul.f32 -1.442695, %v280_v53  ;;  %v1145_v52 = vadd.s32 4294967232, %v1086_v13 }
  0x93   : > { %v753_v58 = vmul.f32 -1.442695, %v278_v55 }
  0x94   : > { %811 = vpow2.f32 %v757_v56 }
  0x95   : > { %813 = vpow2.f32 %v755_v57 }
  0x96   : > { %815 = vpow2.f32 %v753_v58 }
  0x97   : > { %v246_v59 = vpop.xlane.xlu2 %245  ;;  %v240_v60 = vpop.xlane.xlu1 %239 }
  0x98   : > { %v283_v61 = vadd.f32 %v1069_v49, %v246_v59  ;;  %v281_v62 = vadd.f32 %v1069_v49, %v240_v60  ;;  %v234_v63 = vpop.xlane.xlu0 %233 }
  0x99   : > { %v279_v0 = vadd.f32 %v1069_v49, %v234_v63 }
  0x9a   : > { %v812_v1 = vpop.eup %811  ;;  %v758_v2 = vmul.f32 -1.442695, %v283_v61  ;;  %v756_v5 = vmul.f32 -1.442695, %v281_v62 }
  0x9b   : > { %v814_v3 = vpop.eup %813  ;;  %v1077_v4 = vadd.f32 1.0, %v812_v1  ;;  %v754_v8 = vmul.f32 -1.442695, %v279_v0 }
  0x9c   : > { %v816_v6 = vpop.eup %815  ;;  %v1079_v7 = vadd.f32 1.0, %v814_v3  ;;  %817 = vpow2.f32 %v758_v2 }
  0x9d   : > { %819 = vrcp.f32 %v1077_v4  ;;  %v1083_v10 = vadd.f32 1.0, %v816_v6  ;;  %v429_v28 = vand.u32 2147483648, %v1077_v4  ;;  %vm423_vm1 = vweird.f32 %v1077_v4 }
  0x9e   : > { %821 = vrcp.f32 %v1079_v7  ;;  %v399_v29 = vand.u32 2147483648, %v1079_v7  ;;  %v427_v36 = vand.u32 2147483647, %v1077_v4  ;;  %vm393_vm2 = vweird.f32 %v1079_v7 }
  0x9f   : > { %823 = vpow2.f32 %v756_v5  ;;  %v255_v11 = vpop.xlane.xlu2 %254  ;;  %v252_v32 = vpop.xlane.xlu1 %251  ;;  %v369_v38 = vand.u32 2147483648, %v1083_v10  ;;  %v367_v41 = vand.u32 2147483647, %v1083_v10  ;;  %v1134_v44 = vor.u32 1.1754944e-38, %v429_v28 }
  0xa0   : > { %825 = vpow2.f32 %v754_v8  ;;  %v286_v14 = vadd.f32 %v1069_v49, %v255_v11  ;;  %v285_v42 = vadd.f32 %v1069_v49, %v252_v32  ;;  %v249_v43 = vpop.xlane.xlu0 %248  ;;  %v397_v45 = vand.u32 2147483647, %v1079_v7 }
  0xa1   : > { %827 = vrcp.f32 %v1083_v10  ;;  %v1138_v46 = vor.u32 1.1754944e-38, %v399_v29  ;;  %vm363_vm3 = vweird.f32 %v1083_v10  ;;  %v370_v53 = vor.u32 1.1754944e-38, %v369_v38 }
  0xa2   : > { %v818_v12 = vpop.eup %817  ;;  %v761_v18 = vmul.f32 -1.442695, %v286_v14  ;;  %v284_v55 = vadd.f32 %v1069_v49, %v249_v43  ;;  %vm1155_vm4 = vcmp.eq.f32.partialorder %v367_v41, 8.507059e+37  ;;  %v760_v61 = vmul.f32 -1.442695, %v285_v42 }
  0xa3   : > { %v1089_v15 = vpop.eup %819  ;;  %v1091_v16 = vadd.f32 1.0, %v818_v12  ;;  %vm1181_vm10 = vcmp.eq.f32.partialorder %v427_v36, 8.507059e+37  ;;  %vm1186_vm11 = vcmp.eq.f32.partialorder %v397_v45, 8.507059e+37 }
  0xa4   : > { %v1093_v17 = vpop.eup %821  ;;  %v419_v20 = vmul.f32 %v1089_v15, %v1077_v4  ;;  %vm424_vm5 = vweird.f32 %v1089_v15  ;;  %v759_v9 = vmul.f32 -1.442695, %v284_v55 }
  0xa5   : > { %v824_v19 = vpop.eup %823  ;;  %829 = vrcp.f32 %v1091_v16  ;;  %v389_v26 = vmul.f32 %v1093_v17, %v1079_v7  ;;  %v444_v59 = vand.u32 2147483648, %v1091_v16  ;;  %vm394_vm6 = vweird.f32 %v1093_v17  ;;  %vm1177_vm9 = vmor %vm423_vm1, %vm424_vm5 }
  0xa6   : > { %v826_v21 = vpop.eup %825  ;;  %v1101_v23 = vadd.f32 1.0, %v824_v19  ;;  %831 = vpow2.f32 %v761_v18  ;;  %v420_v33 = vsub.f32 1.0, %v419_v20  ;;  %vm438_vm8 = vweird.f32 %v1091_v16  ;;  %vm1216_vm15 = vmor %vm393_vm2, %vm394_vm6 }
  0xa7   : > { %v1103_v24 = vpop.eup %827  ;;  %v1110_v27 = vadd.f32 1.0, %v826_v21  ;;  %v390_v40 = vsub.f32 1.0, %v389_v26  ;;  %v264_v3 = vpop.xlane.xlu2 %263  ;;  %v442_v5 = vand.u32 2147483647, %v1091_v16  ;;  %v1190_v19 = vor.u32 1.1754944e-38, %v444_v59 }
  0xa8   : > { %v359_v30 = vmul.f32 %v1103_v24, %v1083_v10  ;;  %833 = vrcp.f32 %v1101_v23  ;;  %v421_v48 = vmul.f32 %v1089_v15, %v420_v33  ;;  %vm364_vm7 = vweird.f32 %v1103_v24  ;;  %v258_v43 = vpop.xlane.xlu0 %257 }
  0xa9   : > { %835 = vrcp.f32 %v1110_v27  ;;  %v391_v57 = vmul.f32 %v1093_v17, %v390_v40  ;;  %v382_v20 = vand.u32 2147483647, %v1110_v27  ;;  %vm1197_vm12 = vmor %vm363_vm3, %vm364_vm7  ;;  %vm408_vm13 = vweird.f32 %v1101_v23 }
  0xaa   : > { %v360_v37 = vsub.f32 1.0, %v359_v30  ;;  %v422_v0 = vadd.f32 %v1089_v15, %v421_v48  ;;  %v412_v21 = vand.u32 2147483647, %v1101_v23  ;;  %vm378_vm14 = vweird.f32 %v1110_v27 }
  0xab   : > { %v1129_v39 = vpop.eup %829  ;;  %v392_v14 = vadd.f32 %v1093_v17, %v391_v57  ;;  %v384_v30 = vand.u32 2147483648, %v1110_v27  ;;  %vm619_vm1 = vcmask 130112   ;;  %vm1227_vm5 = vcmp.eq.f32.partialorder %v382_v20, 8.507059e+37 }
  0xac   : > { %v832_v47 = vpop.eup %831  ;;  %v361_v50 = vmul.f32 %v1103_v24, %v360_v37  ;;  %v434_v51 = vmul.f32 %v1129_v39, %v1091_v16  ;;  %v426_v28 = vsel %vm1177_vm9, %v1089_v15, %v422_v0  ;;  %vm439_vm0 = vweird.f32 %v1129_v39 }
  0xad   : > { %v1160_v60 = vadd.f32 1.0, %v832_v47  ;;  %v396_v37 = vsel %vm1216_vm15, %v1093_v17, %v392_v14  ;;  %v289_v38 = vadd.f32 %v1069_v49, %v264_v3  ;;  %vm1234_vm2 = vcmp.eq.f32.partialorder %v442_v5, 8.507059e+37 }
  0xae   : > { %v1152_v56 = vpop.eup %833  ;;  %v362_v1 = vadd.f32 %v1103_v24, %v361_v50  ;;  %v435_v2 = vsub.f32 1.0, %v434_v51  ;;  %vm623_vm7 = vcmask 195712   ;;  %v385_v48 = vor.u32 1.1754944e-38, %v384_v30 }
  0xaf   : > { %v404_v62 = vmul.f32 %v1152_v56, %v1101_v23  ;;  %v836_v63 = vpop.eup %835  ;;  %837 = vrcp.f32 %v1160_v60  ;;  %vm409_vm6 = vweird.f32 %v1152_v56  ;;  %v764_v50 = vmul.f32 -1.442695, %v289_v38  ;;  %v273_v0 = vpop.xlane.xlu2 %272 }
  0xb0   : > { %v374_v8 = vmul.f32 %v836_v63, %v1110_v27  ;;  %839 = vpow2.f32 %v760_v61  ;;  %v366_v29 = vsel %vm1197_vm12, %v1103_v24, %v362_v1  ;;  %v436_v10 = vmul.f32 %v1129_v39, %v435_v2  ;;  %v261_v24 = vpop.xlane.xlu1 %260  ;;  %vm1267_vm12 = vmor %vm438_vm8, %vm439_vm0 }
  0xb1   : > { %v405_v6 = vsub.f32 1.0, %v404_v62  ;;  %vm379_vm3 = vweird.f32 %v836_v63  ;;  %841 = vpow2.f32 %v759_v9  ;;  %v371_v40 = vsel %vm1155_vm4, %v370_v53, %v366_v29 }
  0xb2   : > { %v375_v26 = vsub.f32 1.0, %v374_v8  ;;  %v437_v47 = vadd.f32 %v1129_v39, %v436_v10  ;;  %vm380_vm9 = vmor %vm378_vm14, %vm379_vm3  ;;  %v288_v51 = vadd.f32 %v1069_v49, %v261_v24  ;;  %843 = vpow2.f32 %v764_v50  ;;  %v267_v24 = vpop.xlane.xlu0 %266 }
  0xb3   : > { %v406_v15 = vmul.f32 %v1152_v56, %v405_v6  ;;  %v287_v62 = vadd.f32 %v1069_v49, %v258_v43  ;;  %v1255_v27 = vsel %vm1181_vm10, %v1134_v44, %v426_v28  ;;  %v414_v1 = vand.u32 2147483648, %v1101_v23  ;;  %vm1279_vm10 = vmor %vm408_vm13, %vm409_vm6 }
  0xb4   : > { %v376_v33 = vmul.f32 %v836_v63, %v375_v26  ;;  %v763_v61 = vmul.f32 -1.442695, %v288_v51  ;;  %vm627_vm4 = vcmask 261312   ;;  %v616_v3 = vperm.slane %v371_v40, %v1086_v13 }
  0xb5   : > { %v1222_v36 = vpop.eup %837  ;;  %v407_v53 = vadd.f32 %v1152_v56, %v406_v15  ;;  %v441_v6 = vsel %vm1267_vm12, %v1129_v39, %v437_v47  ;;  %v487_v39 = vand.u32 2147483647, %v1160_v60  ;;  %v489_v12 = vand.u32 2147483648, %v1160_v60 }
  0xb6   : > { %v377_v42 = vadd.f32 %v836_v63, %v376_v33  ;;  %v479_v17 = vmul.f32 %v1222_v36, %v1160_v60  ;;  %v840_v45 = vpop.eup %839  ;;  %vm413_vm8 = vcmp.eq.f32.partialorder %v412_v21, 8.507059e+37  ;;  %v415_v14 = vor.u32 1.1754944e-38, %v414_v1 }
  0xb7   : > { %v1247_v58 = vadd.f32 1.0, %v840_v45  ;;  %v842_v2 = vpop.eup %841  ;;  %v411_v11 = vsel %vm1279_vm10, %v1152_v56, %v407_v53  ;;  %v446_v20 = vsel %vm1234_vm2, %v1190_v19, %v441_v6  ;;  %vm484_vm13 = vweird.f32 %v1222_v36 }
  0xb8   : > { %v381_v55 = vsel %vm380_vm9, %v836_v63, %v377_v42  ;;  %v480_v57 = vsub.f32 1.0, %v479_v17  ;;  %v401_v63 = vsel %vm1186_vm11, %v1138_v46, %v396_v37  ;;  %v762_v46 = vmul.f32 -1.442695, %v287_v62  ;;  %v844_v18 = vpop.eup %843  ;;  %v270_v32 = vpop.xlane.xlu1 %269 }
  0xb9   : > { %v386_v59 = vsel %vm1227_vm5, %v385_v48, %v381_v55  ;;  %845 = vrcp.f32 %v1247_v58  ;;  %v1284_v9 = vadd.f32 1.0, %v842_v2  ;;  %v622_v23 = vperm.slane %v401_v63, %v1106_v25 }
  0xba   : > { %v618_v44 = vperm.slane %v386_v59, %v1124_v35  ;;  %847 = vpow2.f32 %v763_v61  ;;  %v481_v16 = vmul.f32 %v1222_v36, %v480_v57  ;;  %v292_v35 = vadd.f32 %v1069_v49, %v273_v0 }
  0xbb   : > { %849 = vpow2.f32 %v762_v46  ;;  %vm483_vm11 = vweird.f32 %v1160_v60  ;;  %v416_v26 = vsel %vm413_vm8, %v415_v14, %v411_v11  ;;  %v1303_v21 = vadd.f32 1.0, %v844_v18 }
  0xbc   : > { %851 = vrcp.f32 %v1284_v9  ;;  %v620_v4 = vsel %vm619_vm1, %v618_v44, %v616_v3  ;;  %v482_v25 = vadd.f32 %v1222_v36, %v481_v16  ;;  %v767_v28 = vmul.f32 -1.442695, %v292_v35  ;;  %vm1321_vm1 = vmor %vm483_vm11, %vm484_vm13 }
  0xbd   : > { %v630_v10 = vperm.slane %v1255_v27, %v1099_v22  ;;  %vm1307_vm14 = vcmp.eq.f32.partialorder %v487_v39, 8.507059e+37  ;;  %v490_v30 = vor.u32 1.1754944e-38, %v489_v12  ;;  %vm631_vm15 = vcmask 326912   ;;  %v276_v12 = vpop.xlane.xlu0 %275 }
  0xbe   : > { %v624_v15 = vsel %vm623_vm7, %v622_v23, %v620_v4  ;;  %vm635_vm0 = vcmask 392512   ;;  %853 = vrcp.f32 %v1303_v21  ;;  %v634_v7 = vperm.slane %v446_v20, %v1117_v31 }
  0xbf   : > { %v1300_v56 = vpop.eup %845  ;;  %v626_v22 = vperm.slane %v416_v26, %v1120_v34  ;;  %855 = vpow2.f32 %v767_v28  ;;  %v486_v42 = vsel %vm1321_vm1, %v1222_v36, %v482_v25  ;;  %v474_v31 = vand.u32 2147483648, %v1247_v58 }
  0xc0   : > { %v848_v29 = vpop.eup %847  ;;  %v464_v33 = vmul.f32 %v1300_v56, %v1247_v58  ;;  %v291_v17 = vadd.f32 %v1069_v49, %v270_v32  ;;  %v1338_v43 = vadd.s32 4294967248, %v1086_v13  ;;  %v1344_v48 = vadd.s32 4294967216, %v1086_v13 }
  0xc1   : > { %v850_v37 = vpop.eup %849  ;;  %v1325_v40 = vadd.f32 1.0, %v848_v29  ;;  %v628_v60 = vsel %vm627_vm4, %v626_v22, %v624_v15  ;;  %v1347_v36 = vadd.s32 4294967224, %v1086_v13  ;;  %v1352_v50 = vsel %vm1307_vm14, %v490_v30, %v486_v42 }
  0xc2   : > { %v1327_v41 = vpop.eup %851  ;;  %v1333_v34 = vadd.f32 1.0, %v850_v37  ;;  %v465_v47 = vsub.f32 1.0, %v464_v33  ;;  %vm468_vm3 = vweird.f32 %v1247_v58  ;;  %v472_v51 = vand.u32 2147483647, %v1247_v58 }
  0xc3   : > { %v449_v45 = vmul.f32 %v1327_v41, %v1284_v9  ;;  %857 = vrcp.f32 %v1325_v40  ;;  %v1358_v57 = vor.u32 1.1754944e-38, %v474_v31  ;;  %v632_v59 = vsel %vm631_vm15, %v630_v10, %v628_v60 }
  0xc4   : > { %859 = vrcp.f32 %v1333_v34  ;;  %v1356_v55 = vpop.eup %853  ;;  %vm453_vm5 = vweird.f32 %v1284_v9  ;;  %v766_v61 = vmul.f32 -1.442695, %v291_v17  ;;  %v457_v27 = vand.u32 2147483647, %v1284_v9 }
  0xc5   : > { %v450_v53 = vsub.f32 1.0, %v449_v45  ;;  %v856_v62 = vpop.eup %855  ;;  %v459_v63 = vand.u32 2147483648, %v1284_v9  ;;  %v524_v1 = vmul.f32 %v1356_v55, %v1303_v21  ;;  %v646_v2 = vperm.slane %v1352_v50, %v1145_v52 }
  0xc6   : > { %v466_v3 = vmul.f32 %v1300_v56, %v465_v47  ;;  %v1370_v5 = vadd.f32 1.0, %v856_v62  ;;  %v290_v44 = vadd.f32 %v1069_v49, %v267_v24  ;;  %vm469_vm2 = vweird.f32 %v1300_v56 }
  0xc7   : > { %v451_v0 = vmul.f32 %v1327_v41, %v450_v53  ;;  %v1377_v6 = vsel %vm635_vm0, %v634_v7, %v632_v59  ;;  %vm454_vm6 = vweird.f32 %v1327_v41  ;;  %861 = vpow2.f32 %v766_v61  ;;  %vm1419_vm8 = vmor %vm468_vm3, %vm469_vm2 }
  0xc8   : > { %vm1382_vm7 = vcmp.eq.f32.partialorder %v472_v51, 8.507059e+37  ;;  %v525_v11 = vsub.f32 1.0, %v524_v1  ;;  %863 = vrcp.f32 %v1370_v5  ;;  %vm1390_vm9 = vcmp.eq.f32.partialorder %v457_v27, 8.507059e+37  ;;  %vm1403_vm10 = vmor %vm453_vm5, %vm454_vm6 }
  0xc9   : > { %v1373_v46 = vpop.eup %857  ;;  %v452_v35 = vadd.f32 %v1327_v41, %v451_v0  ;;  %v460_v14 = vor.u32 1.1754944e-38, %v459_v63  ;;  %vm528_vm4 = vweird.f32 %v1303_v21  ;;  %v467_v20 = vadd.f32 %v1300_v56, %v466_v3 }
  0xca   : > { %v1380_v8 = vpop.eup %859  ;;  %v509_v39 = vmul.f32 %v1373_v46, %v1325_v40  ;;  %v532_v4 = vand.u32 2147483647, %v1303_v21  ;;  %v765_v25 = vmul.f32 -1.442695, %v290_v44  ;;  %vm639_vm12 = vcmask 458112  }
  0xcb   : > { %v494_v18 = vmul.f32 %v1380_v8, %v1333_v34  ;;  %v534_v29 = vand.u32 2147483648, %v1303_v21  ;;  %v517_v10 = vand.u32 2147483647, %v1325_v40  ;;  %v293_v30 = vadd.f32 %v1069_v49, %v276_v12 }
  0xcc   : > { %v510_v26 = vsub.f32 1.0, %v509_v39  ;;  %v456_v32 = vsel %vm1403_vm10, %v1327_v41, %v452_v35  ;;  %v526_v15 = vmul.f32 %v1356_v55, %v525_v11  ;;  %865 = vpow2.f32 %v765_v25 }
  0xcd   : > { %v495_v19 = vsub.f32 1.0, %v494_v18  ;;  %v862_v9 = vpop.eup %861  ;;  %vm513_vm11 = vweird.f32 %v1325_v40  ;;  %v519_v49 = vand.u32 2147483648, %v1325_v40  ;;  %v502_v37 = vand.u32 2147483647, %v1333_v34 }
  0xce   : > { %v511_v33 = vmul.f32 %v1373_v46, %v510_v26  ;;  %v768_v7 = vmul.f32 -1.442695, %v293_v30  ;;  %v1426_v22 = vpop.eup %863  ;;  %v471_v38 = vsel %vm1419_vm8, %v1300_v56, %v467_v20  ;;  %vm1431_vm13 = vcmp.eq.f32.partialorder %v532_v4, 8.507059e+37 }
  0xcf   : > { %v496_v58 = vmul.f32 %v1380_v8, %v495_v19  ;;  %v504_v42 = vand.u32 2147483648, %v1333_v34  ;;  %v1437_v31 = vadd.f32 1.0, %v862_v9  ;;  %v461_v17 = vsel %vm1390_vm9, %v460_v14, %v456_v32 }
  0xd0   : > { %vm529_vm14 = vweird.f32 %v1356_v55  ;;  %v569_v60 = vmul.f32 %v1426_v22, %v1370_v5  ;;  %867 = vpow2.f32 %v768_v7  ;;  %v527_v56 = vadd.f32 %v1356_v55, %v526_v15 }
  0xd1   : > { %v512_v45 = vadd.f32 %v1373_v46, %v511_v33  ;;  %vm514_vm15 = vweird.f32 %v1373_v46  ;;  %869 = vrcp.f32 %v1437_v31  ;;  %v476_v47 = vsel %vm1382_vm7, %v1358_v57, %v471_v38  ;;  %vm1456_vm1 = vmor %vm528_vm4, %vm529_vm14 }
  0xd2   : > { %v535_v51 = vor.u32 1.1754944e-38, %v534_v29  ;;  %vm498_vm0 = vweird.f32 %v1333_v34  ;;  %v579_v53 = vand.u32 2147483648, %v1370_v5  ;;  %v866_v59 = vpop.eup %865  ;;  %v638_v61 = vperm.slane %v461_v17, %v1338_v43  ;;  %vm1464_vm5 = vmor %vm513_vm11, %vm514_vm15 }
  0xd3   : > { %v497_v0 = vadd.f32 %v1380_v8, %v496_v58  ;;  %vm499_vm3 = vweird.f32 %v1380_v8  ;;  %v570_v27 = vsub.f32 1.0, %v569_v60  ;;  %vm1468_vm2 = vcmp.eq.f32.partialorder %v517_v10, 8.507059e+37 }
  0xd4   : > { %v520_v21 = vor.u32 1.1754944e-38, %v519_v49  ;;  %vm1472_vm6 = vcmp.eq.f32.partialorder %v502_v37, 8.507059e+37  ;;  %v1476_v1 = vadd.f32 1.0, %v866_v59  ;;  %v531_v3 = vsel %vm1456_vm1, %v1356_v55, %v527_v56  ;;  %vm1488_vm7 = vmor %vm498_vm0, %vm499_vm3 }
  0xd5   : > { %v516_v40 = vsel %vm1464_vm5, %v1373_v46, %v512_v45  ;;  %v505_v44 = vor.u32 1.1754944e-38, %v504_v42  ;;  %v577_v16 = vand.u32 2147483647, %v1370_v5  ;;  %v642_v11 = vperm.slane %v476_v47, %v1149_v54 }
  0xd6   : > { %v868_v35 = vpop.eup %867  ;;  %vm573_vm9 = vweird.f32 %v1370_v5  ;;  %v580_v12 = vor.u32 1.1754944e-38, %v579_v53  ;;  %871 = vrcp.f32 %v1476_v1  ;;  %v640_v46 = vsel %vm639_vm12, %v638_v61, %v1377_v6 }
  0xd7   : > { %v870_v55 = vpop.eup %869  ;;  %v501_v23 = vsel %vm1488_vm7, %v1380_v8, %v497_v0  ;;  %v571_v54 = vmul.f32 %v1426_v22, %v570_v27  ;;  %v1500_v34 = vadd.f32 1.0, %v868_v35  ;;  %v1504_v14 = vsel %vm1431_vm13, %v535_v51, %v531_v3 }
  0xd8   : > { %v521_v18 = vsel %vm1468_vm2, %v520_v21, %v516_v40  ;;  %v554_v20 = vmul.f32 %v870_v55, %v1437_v31  ;;  %vm643_vm4 = vcmask 523712   ;;  %v562_v6 = vand.u32 2147483647, %v1437_v31 }
  0xd9   : > { %v564_v4 = vand.u32 2147483648, %v1437_v31  ;;  %873 = vrcp.f32 %v1500_v34  ;;  %vm1512_vm12 = vcmp.eq.f32.partialorder %v577_v16, 8.507059e+37  ;;  %v506_v26 = vsel %vm1472_vm6, %v505_v44, %v501_v23 }
  0xda   : > { %v555_v25 = vsub.f32 1.0, %v554_v20  ;;  %vm558_vm10 = vweird.f32 %v1437_v31  ;;  %vm574_vm8 = vweird.f32 %v1426_v22  ;;  %v654_v28 = vperm.slane %v521_v18, %v1344_v48 }
  0xdb   : > { %v572_v29 = vadd.f32 %v1426_v22, %v571_v54  ;;  %v644_v10 = vsel %vm643_vm4, %v642_v11, %v640_v46  ;;  %vm647_vm11 = vcmask 589312   ;;  %vm559_vm13 = vweird.f32 %v870_v55  ;;  %vm1535_vm0 = vmor %vm573_vm9, %vm574_vm8 }
  0xdc   : > { %v872_v19 = vpop.eup %871  ;;  %v556_v30 = vmul.f32 %v870_v55, %v555_v25  ;;  %v547_v32 = vand.u32 2147483647, %v1476_v1  ;;  %v549_v15 = vand.u32 2147483648, %v1476_v1  ;;  %v650_v33 = vperm.slane %v506_v26, %v1347_v36  ;;  %vm1541_vm5 = vmor %vm558_vm10, %vm559_vm13 }
  0xdd   : > { %vm1525_vm14 = vcmp.eq.f32.partialorder %v562_v6, 8.507059e+37  ;;  %v565_v24 = vor.u32 1.1754944e-38, %v564_v4  ;;  %v539_v48 = vmul.f32 %v872_v19, %v1476_v1  ;;  %vm543_vm15 = vweird.f32 %v1476_v1 }
  0xde   : > { %v557_v49 = vadd.f32 %v870_v55, %v556_v30  ;;  %vm651_vm1 = vcmask 654912   ;;  %vm655_vm3 = vcmask 720512   ;;  %v576_v41 = vsel %vm1535_vm0, %v1426_v22, %v572_v29 }
  0xdf   : > { %v874_v36 = vpop.eup %873  ;;  %v540_v38 = vsub.f32 1.0, %v539_v48  ;;  %v648_v5 = vsel %vm647_vm11, %v646_v2, %v644_v10  ;;  %v657_v58 = vadd.s32 4294967208, %v1086_v13  ;;  %vm1553_vm2 = vcmp.eq.f32.partialorder %v547_v32, 8.507059e+37 }
  0xe0   : > { %v550_v31 = vor.u32 1.1754944e-38, %v549_v15  ;;  %v584_v17 = vmul.f32 %v874_v36, %v1500_v34  ;;  %v561_v60 = vsel %vm1541_vm5, %v870_v55, %v557_v49  ;;  %vm544_vm6 = vweird.f32 %v872_v19 }
  0xe1   : > { %v541_v56 = vmul.f32 %v872_v19, %v540_v38  ;;  %vm588_vm7 = vweird.f32 %v1500_v34  ;;  %v652_v22 = vsel %vm651_vm1, %v650_v33, %v648_v5  ;;  %v581_v50 = vsel %vm1512_vm12, %v580_v12, %v576_v41  ;;  %vm545_vm9 = vmor %vm543_vm15, %vm544_vm6 }
  0xe2   : > { %v585_v52 = vsub.f32 1.0, %v584_v17  ;;  %v592_v2 = vand.u32 2147483647, %v1500_v34  ;;  %v665_v45 = vadd.s32 4294967192, %v1086_v13  ;;  %v566_v51 = vsel %vm1525_vm14, %v565_v24, %v561_v60 }
  0xe3   : > { %v542_v47 = vadd.f32 %v872_v19, %v541_v56  ;;  %v594_v53 = vand.u32 2147483648, %v1500_v34  ;;  %v661_v59 = vadd.s32 4294967200, %v1086_v13  ;;  %vm589_vm4 = vweird.f32 %v874_v36 }
  0xe4   : > { %v586_v61 = vmul.f32 %v874_v36, %v585_v52  ;;  %v656_v62 = vsel %vm655_vm3, %v654_v28, %v652_v22  ;;  %v658_v0 = vperm.slane %v1504_v14, %v657_v58  ;;  %vm659_vm12 = vcmask 786112   ;;  %vm590_vm8 = vmor %vm588_vm7, %vm589_vm4 }
  0xe5   : > { %v546_v27 = vsel %vm545_vm9, %v872_v19, %v542_v47  ;;  %vm663_vm10 = vcmask 851712   ;;  %v669_v57 = vadd.s32 4294967184, %v1086_v13  ;;  %v666_v43 = vperm.slane %v566_v51, %v665_v45 }
  0xe6   : > { %v551_v63 = vsel %vm1553_vm2, %v550_v31, %v546_v27  ;;  %v587_v21 = vadd.f32 %v874_v36, %v586_v61  ;;  %v673_v1 = vadd.s32 4294967176, %v1086_v13  ;;  %v595_v3 = vor.u32 1.1754944e-38, %v594_v53 }
  0xe7   : > { %v662_v40 = vperm.slane %v551_v63, %v661_v59  ;;  %vm667_vm11 = vcmask 917312   ;;  %vm593_vm13 = vcmp.eq.f32.partialorder %v592_v2, 8.507059e+37  ;;  %v660_v16 = vsel %vm659_vm12, %v658_v0, %v656_v62 }
  0xe8   : > { %v591_v44 = vsel %vm590_vm8, %v874_v36, %v587_v21  ;;  %vm671_vm14 = vcmask 982912   ;;  %v670_v13 = vperm.slane %v581_v50, %v669_v57  ;;  %vm675_vm15 = vcmask 1048512  }
  0xe9   : > { %v596_v35 = vsel %vm593_vm13, %v595_v3, %v591_v44  ;;  %v664_v11 = vsel %vm663_vm10, %v662_v40, %v660_v16 }
  0xea   : > { %v668_v39 = vsel %vm667_vm11, %v666_v43, %v664_v11  ;;  %v674_v12 = vperm.slane %v596_v35, %v673_v1 }
  0xeb   : > { %v672_v55 = vsel %vm671_vm14, %v670_v13, %v668_v39 }
  0xec   : > { %v676_v46 = vsel %vm675_vm15, %v674_v12, %v672_v55 }
  0xed   : > { %678 = vst [vmem:[%s176_s10] sm:$0x1] %v676_v46 }
  0xee   : > { %902 = shalt.err (!%p899_p3)
}
  0xef   : > { %771 = dma.vmem_to_hbm [thread:$0]  (%p1000_p5), %s691_s11, 16, %s693_s12, %s680_s13  }
  0xf0 PF: > { %p777_p4 = scmp.ge.s32.totalorder %s937_s17, 2  ;;  %s704_s28 = sand.u32 1, %s925_s14  }
  0xf1   : > { %s705_s29 = scalar_lea.sflag [#allocation4], %s704_s28 }
  0xf2   : > { %p774_p7 = pnand %p777_p4, %p1004_p6 }
  0xf4   : > { %p775_p8 = pneg %p774_p7 }
  0xf6   : > { %920 = dma.done.wait (%p775_p8), %s705_s29, 16  }
  0xf7   : > { %922 = vsyncadd (%p775_p8), %s705_s29, 4294967280  ;;  %p14_p9 = scmp.ge.s32.totalorder %s987_s19, 4   ;;  %s1676_s14 = smov %s929_s15 }
  0xf8   : > { %s1677_s15 = smov %s933_s16  ;;  %s1678_s16 = smov %s998_s22 }
  0xf9   : > { %s1679_s17 = smov %s987_s19  ;;  %16 = sbr.rel (!%p14_p9) target bundleno = 5 (0x5), region = 67 }
  0xfe   :  { %710 = vsyncpa [#allocation4], 1 }
  0xff   :  { %712 = vsyncpa [#allocation4 + $0x1], 1 }

</bundles_post_ra>
